<compile_context>
chip_gen: v5e
topology: v5e:2x2
jax: 0.10.0
libtpu: 0.0.40
codegen_flags: <defaults>
</compile_context>

<pallas_src>
import functools

import jax
import jax.numpy as jnp
from jax.experimental import pallas as pl
from jax.experimental.pallas import tpu as pltpu


def _readout_kernel(h_ref, o_ref, acc_ref, *, n_total, tn):
    # Grid: (batch_tiles, d_tiles, node_tiles); node (reduction) axis is last.
    # h_ref:   (TB, TN, TD) input tile (VMEM)
    # o_ref:   (TB, TD)     output tile (same block for every node step)
    # acc_ref: (TB, TD)     f32 scratch accumulator
    k = pl.program_id(2)
    last = pl.num_programs(2) - 1
    inv_n = 1.0 / n_total

    @pl.when(k == 0)
    def _():
        acc_ref[...] = jnp.zeros_like(acc_ref)

    if n_total % tn == 0:
        # Every node tile is full: no masking anywhere on the hot path.
        acc_ref[...] += jnp.sum(h_ref[...], axis=1, dtype=jnp.float32)

        @pl.when(k == last)
        def _():
            o_ref[...] = (acc_ref[...] * inv_n).astype(o_ref.dtype)

    else:
        # Only the boundary (last) node tile carries padding rows; keep all
        # other grid steps on the cheap unmasked path.
        @pl.when(k != last)
        def _():
            acc_ref[...] += jnp.sum(h_ref[...], axis=1, dtype=jnp.float32)

        @pl.when(k == last)
        def _():
            # Narrow (1, TN, 1) iota mask, broadcast against the tile.
            node_ids = k * tn + jax.lax.broadcasted_iota(jnp.int32, (1, tn, 1), 1)
            h = jnp.where(node_ids < n_total, h_ref[...], 0.0)
            total = acc_ref[...] + jnp.sum(h, axis=1, dtype=jnp.float32)
            o_ref[...] = (total * inv_n).astype(o_ref.dtype)


def readout(h: jax.Array, *, tb: int | None = None, tn: int | None = None,
            td: int | None = None) -> jax.Array:
    """Pallas equivalent of ReadOut.forward: mean over dim=1.

    h: (B, N, D) -> (B, D)
    """
    B, N, D = h.shape
    itemsize = jnp.dtype(h.dtype).itemsize
    # Sublane pack for this dtype: 8 (f32), 16 (bf16/f16), 32 (int8/fp8).
    pack = max(8, 32 // itemsize)

    # ---- batch tile --------------------------------------------------------
    if tb is None:
        tb = min(B, 8)
    tb = max(1, min(tb, B))
    b_tiles = pl.cdiv(B, tb)

    # ---- feature (lane) tile -----------------------------------------------
    # Keep D as the lane axis. Only split it (into lane-dense multiple-of-128
    # tiles) when the batch axis cannot supply >=2 parallel blocks, so that on
    # v7x (2 TensorCores) both cores still get work.
    if td is None:
        if b_tiles == 1 and D >= 256:
            td = ((pl.cdiv(D, 2) + 127) // 128) * 128
        else:
            td = D
    td = max(1, min(td, D))
    d_tiles = pl.cdiv(D, td)

    # ---- node (reduction) tile ---------------------------------------------
    # Target ~4 MiB input tiles (double-buffered). On 64-MiB-VMEM chips
    # (v7x-class, ~3.2 TB/s HBM) bump to ~8 MiB to amortize per-step overhead.
    target_bytes = 4 * 1024 * 1024
    try:
        vmem_cap = getattr(pltpu.get_tpu_info(), "vmem_capacity_bytes", None)
        if vmem_cap is not None and vmem_cap <= 64 * 1024 * 1024:
            target_bytes = 8 * 1024 * 1024
    except Exception:
        pass

    if tn is None:
        row_bytes = max(1, tb * td * itemsize)
        tn = max(1, min(N, target_bytes // row_bytes))
        # Never let tn fall below the sublane pack (unless it covers all of N):
        # shrink the batch tile instead, keeping the (8,128) block rule happy.
        while tn < min(N, pack) and tb > 1:
            tb = max(1, tb // 2)
            b_tiles = pl.cdiv(B, tb)
            row_bytes = max(1, tb * td * itemsize)
            tn = max(1, min(N, target_bytes // row_bytes))
        if tn < N:
            tn = max(tn, pack)
            # Balance node tiles so the boundary tile isn't mostly padding,
            # then round up to the sublane pack.
            n_tiles_t = pl.cdiv(N, tn)
            tn = min(N, ((pl.cdiv(N, n_tiles_t) + pack - 1) // pack) * pack)
    tn = max(1, min(tn, N))
    n_tiles = pl.cdiv(N, tn)

    # ---- VMEM budget (explicit, covers double-buffered tiles + acc) --------
    vmem_needed = (
        2 * tb * tn * td * itemsize      # double-buffered input tiles
        + 2 * tb * td * itemsize         # double-buffered output tile
        + tb * td * 4                    # f32 accumulator
        + (2 << 20)                      # headroom
    )
    vmem_limit = int(max(vmem_needed, 32 * 1024 * 1024))

    kernel = functools.partial(_readout_kernel, n_total=N, tn=tn)

    cost = pl.CostEstimate(
        flops=B * N * D,                 # one add per element (reduce)
        transcendentals=0,
        bytes_accessed=B * N * D * itemsize + B * D * itemsize,
    )

    return pl.pallas_call(
        kernel,
        out_shape=jax.ShapeDtypeStruct((B, D), h.dtype),
        grid_spec=pltpu.PrefetchScalarGridSpec(
            num_scalar_prefetch=0,
            grid=(b_tiles, d_tiles, n_tiles),     # reduction (node) axis last
            in_specs=[
                pl.BlockSpec((tb, tn, td), lambda b, d, k: (b, k, d)),
            ],
            out_specs=pl.BlockSpec((tb, td), lambda b, d, k: (b, d)),
            scratch_shapes=[pltpu.VMEM((tb, td), jnp.float32)],
        ),
        compiler_params=pltpu.CompilerParams(
            dimension_semantics=("parallel", "parallel", "arbitrary"),
            vmem_limit_bytes=vmem_limit,
        ),
        cost_estimate=cost,
    )(h)


if __name__ == "__main__":
    key = jax.random.PRNGKey(0)

    # --- Test 1: module-scale small shapes (single block) ------------------
    B, N, D = 2, 8, 32
    h = jax.random.normal(key, (B, N, D), dtype=jnp.float32)
    out = jax.block_until_ready(readout(h))
    ref = jnp.mean(h, axis=1)
    assert out.shape == (B, D), out.shape
    assert jnp.allclose(out, ref, atol=1e-5, rtol=1e-5), "mismatch (small)"

    # --- Test 2: multi-step reduction, batch tiling, boundary-tile mask ----
    B2, N2, D2 = 16, 300, 128
    h2 = jax.random.normal(jax.random.PRNGKey(1), (B2, N2, D2), dtype=jnp.float32)
    out2 = jax.block_until_ready(readout(h2, tb=8, tn=128))
    ref2 = jnp.mean(h2, axis=1)
    assert out2.shape == (B2, D2), out2.shape
    assert jnp.allclose(out2, ref2, atol=1e-5, rtol=1e-5), "mismatch (tiled)"

    # --- Test 3: single batch block -> lane-dense D split (parallel axis) --
    B3, N3, D3 = 1, 64, 512
    h3 = jax.random.normal(jax.random.PRNGKey(2), (B3, N3, D3), dtype=jnp.float32)
    out3 = jax.block_until_ready(readout(h3))
    ref3 = jnp.mean(h3, axis=1)
    assert out3.shape == (B3, D3), out3.shape
    assert jnp.allclose(out3, ref3, atol=1e-5, rtol=1e-5), "mismatch (D-split)"

    print("KERNEL_OK")
</pallas_src>

<mosaic_0001>
module attributes {stable_mosaic.version = 11 : i64} {
  func.func @_readout_kernel(%arg0: i32, %arg1: i32, %arg2: i32, %arg3: memref<2x8x32xf32, #tpu.memory_space<vmem>>, %arg4: memref<2x32xf32, #tpu.memory_space<vmem>>, %arg5: memref<2x32xf32, #tpu.memory_space<vmem>>) attributes {dimension_semantics = [#tpu.dimension_semantics<parallel>, #tpu.dimension_semantics<parallel>, #tpu.dimension_semantics<arbitrary>], iteration_bounds = array<i64: 1, 1, 1>, scalar_prefetch = 0 : i64, scratch_operands = 1 : i64, tpu.core_type = #tpu.core_type<tc>, window_params = [{transform_indices = @transform_0, window_bounds = array<i64: 2, 8, 32>}, {transform_indices = @transform_1, window_bounds = array<i64: 2, 32>}]} {
    %c0_i32 = arith.constant 0 : i32
    %0 = arith.cmpi eq, %arg2, %c0_i32 : i32
    %1 = arith.extui %0 : i1 to i32
    %c0_i32_0 = arith.constant 0 : i32
    %2 = arith.cmpi ne, %1, %c0_i32_0 : i32
    scf.if %2 {
      %cst_9 = arith.constant 0.000000e+00 : f32
      %11 = vector.broadcast %cst_9 : f32 to vector<2x32xf32>
      %c0_10 = arith.constant 0 : index
      %c0_11 = arith.constant 0 : index
      %12 = vector.load %arg5[%c0_10, %c0_11] : memref<2x32xf32, #tpu.memory_space<vmem>>, vector<2x32xf32>
      tpu.vector_store %arg5[%c0_10, %c0_11], %11 {strides = array<i32>} : memref<2x32xf32, #tpu.memory_space<vmem>>, vector<2x32xf32>,
    } else {
    }
    %c0 = arith.constant 0 : index
    %c0_1 = arith.constant 0 : index
    %3 = vector.load %arg5[%c0, %c0_1] : memref<2x32xf32, #tpu.memory_space<vmem>>, vector<2x32xf32>
    %c0_2 = arith.constant 0 : index
    %c0_3 = arith.constant 0 : index
    %c0_4 = arith.constant 0 : index
    %4 = vector.load %arg3[%c0_2, %c0_3, %c0_4] : memref<2x8x32xf32, #tpu.memory_space<vmem>>, vector<2x8x32xf32>
    %cst = arith.constant dense<0.000000e+00> : vector<2x32xf32>
    %5 = vector.multi_reduction <add>, %4, %cst [1] : vector<2x8x32xf32> to vector<2x32xf32>
    %6 = arith.addf %3, %5 : vector<2x32xf32>
    %c0_5 = arith.constant 0 : index
    %c0_6 = arith.constant 0 : index
    %7 = vector.load %arg5[%c0_5, %c0_6] : memref<2x32xf32, #tpu.memory_space<vmem>>, vector<2x32xf32>
    tpu.vector_store %arg5[%c0_5, %c0_6], %6 {strides = array<i32>} : memref<2x32xf32, #tpu.memory_space<vmem>>, vector<2x32xf32>,
    %c0_i32_7 = arith.constant 0 : i32
    %8 = arith.cmpi eq, %arg2, %c0_i32_7 : i32
    %9 = arith.extui %8 : i1 to i32
    %c0_i32_8 = arith.constant 0 : i32
    %10 = arith.cmpi ne, %9, %c0_i32_8 : i32
    scf.if %10 {
      %c0_9 = arith.constant 0 : index
      %c0_10 = arith.constant 0 : index
      %11 = vector.load %arg5[%c0_9, %c0_10] : memref<2x32xf32, #tpu.memory_space<vmem>>, vector<2x32xf32>
      %cst_11 = arith.constant 1.250000e-01 : f32
      %12 = vector.broadcast %cst_11 : f32 to vector<2x32xf32>
      %13 = arith.mulf %11, %12 : vector<2x32xf32>
      %c0_12 = arith.constant 0 : index
      %c0_13 = arith.constant 0 : index
      %14 = vector.load %arg4[%c0_12, %c0_13] : memref<2x32xf32, #tpu.memory_space<vmem>>, vector<2x32xf32>
      tpu.vector_store %arg4[%c0_12, %c0_13], %13 {strides = array<i32>} : memref<2x32xf32, #tpu.memory_space<vmem>>, vector<2x32xf32>,
    } else {
    }
    return
  }
  func.func @transform_0(%arg0: i32, %arg1: i32, %arg2: i32) -> (i32, i32, i32) {
    %c0_i32 = arith.constant 0 : i32
    return %arg0, %arg2, %arg1 : i32, i32, i32
  }
  func.func @transform_1(%arg0: i32, %arg1: i32, %arg2: i32) -> (i32, i32) {
    %c0_i32 = arith.constant 0 : i32
    return %arg0, %arg1 : i32, i32
  }
}

</mosaic_0001>

<bundles_post_ra>
// kernel: tpu_custom_call.1
= control target key start
LH: loop header
LB: loop body
LE: loop exit
PB: predicated region body
PF: predicated region fallthrough
CT: control target
= control target key end

     0   :  { %6 = vsyncpa [#allocation4], 0  ;;  %s161_s0 = inlined_call_operand.hbm [shape: f32[2,8,32], index: 0, kind: input, shape index: {}]   ;;  %s162_s1 = inlined_call_operand.hbm [shape: f32[2,32], index: 1, kind: output, shape index: {}]  }
   0x1   :  { %7 = vsyncpa [#allocation5], 0  ;;  %s12_s8 = sshll.u32 %s161_s0, 4  ;;  %s137_s9 = smov [#allocation3]   ;;  %s13_s8 = int_to_ptr.hbm [resolvable:$true] %s12_s8 }
   0x2   :  { %s14_s10 = sshll.u32 %s137_s9, 4  ;;  %s138_s11 = smov 128   ;;  %s15_s10 = int_to_ptr.vmem [resolvable:$true] %s14_s10 }
   0x3   :  { %s139_s12 = smov 8  }
   0x4   :  { %20 = dma.hbm_to_vmem [thread:$0]  %s13_s8, 256, %s15_s10, [#allocation4], %s138_s11, %s138_s11, %s139_s12  }
   0x5   :  { %133 = dma.done.wait [#allocation4], 256  }
   0x6   :  { %134 = vsyncadd [#allocation4], 4294967040  ;;  %vm29_vm0 = vcmask 254976   ;;  %v140_v0 = vmov 0.0   ;;  %vm34_vm1 = vcmask 261120   ;;  %v32_v1 = vld [vmem:[#allocation3] sm:$0xff] }
   0x7   :  { %30 = vst.msk [vmem:[#allocation2] sm:$0x3] %vm29_vm0, %v140_v0  ;;  %v33_v2 = vld [vmem:[#allocation3 + $0x8] sm:$0xff]  ;;  %v35_v3 = vsel %vm34_vm1, %v32_v1, 0.0  ;;  %vm51_vm2 = vcmask 1041409   ;;  %s141_s0 = smov [#allocation6]  }
   0x8   :  { %v42_v4 = vsel %vm34_vm1, %v33_v2, 0.0  ;;  %v36_v5 = vrot.slane %v35_v3, 4  ;;  %s68_s13 = sshll.u32 %s141_s0, 4  ;;  %s70_s16 = sshll.u32 %s162_s1, 4  ;;  %s69_s13 = int_to_ptr.vmem [resolvable:$true] %s68_s13  ;;  %s71_s16 = int_to_ptr.hbm [resolvable:$true] %s70_s16 }
   0x9   :  { %v43_v6 = vrot.slane %v42_v4, 4 }
   0xa   :  { %v37_v7 = vadd.f32 %v36_v5, %v35_v3 }
   0xb   :  { %v44_v8 = vadd.f32 %v43_v6, %v42_v4 }
   0xc   :  { %v38_v9 = vrot.slane %v37_v7, 2 }
   0xd   :  { %v45_v10 = vrot.slane %v44_v8, 2 }
   0xe   :  { %v39_v11 = vadd.f32 %v38_v9, %v37_v7  ;;  %v31_v15 = vld [vmem:[#allocation2] sm:$0x3] }
   0xf   :  { %v46_v12 = vadd.f32 %v45_v10, %v44_v8 }
  0x10   :  { %v40_v13 = vrot.slane %v39_v11, 1 }
  0x11   :  { %v47_v14 = vrot.slane %v46_v12, 1 }
  0x12   :  { %v41_v16 = vadd.f32 %v40_v13, %v39_v11 }
  0x13   :  { %v48_v17 = vadd.f32 %v47_v14, %v46_v12 }
  0x15   :  { %v52_v18 = vsel %vm51_vm2, %v48_v17, %v41_v16 }
  0x16   :  { %v54_v19 = vadd.f32 %v52_v18, %v31_v15 }
  0x18   :  { %56 = vst.msk [vmem:[#allocation2] sm:$0x3] %vm29_vm0, %v54_v19 }
  0x1f   :  { %v60_v20 = vld [vmem:[#allocation2] sm:$0x3] }
  0x20   :  { %v61_v21 = vmul.f32 0.125, %v60_v20 }
  0x22   :  { %62 = vst.msk [vmem:[#allocation6] sm:$0x3] %vm29_vm0, %v61_v21 }
  0x23   :  { %73 = dma.vmem_to_hbm [thread:$0]  %s69_s13, 32, %s71_s16, [#allocation5]  }
  0x24   :  { %135 = dma.done.wait [#allocation5], 32  }
  0x25   :  { %136 = vsyncadd [#allocation5], 4294967264 }
  0x26   :  { %78 = vsyncpa [#allocation4], 1 }
  0x27   :  { %79 = vsyncpa [#allocation5], 1 }

</bundles_post_ra>
